<compile_context>
chip_gen: v7x
topology: tpu7x:2x2x1
jax: 0.10.0
libtpu: 0.0.40
codegen_flags: <defaults>
</compile_context>

<pallas_src>
import math

import jax
import jax.numpy as jnp
from jax.experimental import pallas as pl
from jax.experimental.pallas import tpu as pltpu


def _round_up(n, m):
    return ((n + m - 1) // m) * m


def _make_affine_kernel(scale, shift):
    scale = float(scale)
    shift = float(shift)

    def kernel(x_ref, y_ref):
        # Baked-in python floats are weakly typed -> the FMA stays in x's
        # native dtype (bf16 stays bf16, f32 stays f32); pure VPU elementwise.
        y_ref[...] = x_ref[...] * scale + shift

    return kernel


def _tile_bytes_for_device():
    # Per-block footprint. 4 buffers (in + out, double-buffered) must fit the
    # default scoped VMEM: 16 MiB on v5e, 32 MiB on v6e/v7x.
    try:
        kind = jax.devices()[0].device_kind.lower()
    except Exception:  # pragma: no cover - no device visible at trace time
        kind = ""
    if "v6" in kind or "v7" in kind:
        return 4 * 1024 * 1024   # 16 MiB total buffering
    return 2 * 1024 * 1024       # 8 MiB total buffering (safe on v5e)


def affine_scalar_forward(x, scale, shift, *, donate_x=False):
    """Pallas equivalent of AffineScalar.forward.

    Args:
      x: [B, ...] float input (e.g. NCHW [B, C, H, W]).
      scale, shift: python floats (the registered scalar buffers).
      donate_x: if True (and no padding was needed), alias x's buffer to the
        output to drop one HBM allocation. Only use if x is dead afterwards.

    Returns:
      (y, log_det) with y = x*scale + shift and
      log_det = log(|scale|) * numel / batch  (scalar, float32).
    """
    orig_shape = x.shape
    B = orig_shape[0]
    N = x.size
    dtype = x.dtype
    itemsize = jnp.dtype(dtype).itemsize
    pack = 32 // itemsize            # sublane packing: 8 f32, 16 bf16, 32 int8

    # --- lane width: prefer a width that divides N exactly (no padding) ----
    lanes = None
    for cand in (1024, 512, 256, 128):
        if N % cand == 0 and N >= cand * pack:
            lanes = cand
            break
    if lanes is None:
        # Rare fallback (N not a multiple of 128, or tiny input).
        lanes = 128
    rows = pl.cdiv(N, lanes)
    padded = rows * lanes

    flat = x.reshape(-1)
    if padded != N:
        flat = jnp.pad(flat, (0, padded - N))   # padded tail sliced off below
    x2d = flat.reshape(rows, lanes)

    # --- row tile: generation-aware size, multiple of the dtype packing ----
    if rows <= pack:
        TR = rows                    # block equals full array dims -> legal
    else:
        tr_target = max(pack,
                        (_tile_bytes_for_device() // (lanes * itemsize))
                        // pack * pack)
        TR = min(tr_target, _round_up(rows, pack))
        if TR >= rows:
            # Split into >= 2 grid steps so both v7x TensorCores get work.
            TR = max(pack, _round_up(pl.cdiv(rows, 2), pack))
    grid = (pl.cdiv(rows, TR),)      # partial last block is masked by Pallas

    aliases = {}
    if donate_x and padded == N:
        aliases = {0: 0}

    y2d = pl.pallas_call(
        _make_affine_kernel(scale, shift),
        out_shape=jax.ShapeDtypeStruct((rows, lanes), dtype),
        grid=grid,
        in_specs=[pl.BlockSpec((TR, lanes), lambda i: (i, 0))],
        out_specs=pl.BlockSpec((TR, lanes), lambda i: (i, 0)),
        compiler_params=pltpu.CompilerParams(
            dimension_semantics=("parallel",),
        ),
        input_output_aliases=aliases,
    )(x2d)

    if padded != N:
        y = y2d.reshape(-1)[:N].reshape(orig_shape)
    else:
        y = y2d.reshape(orig_shape)

    # Scalar log-det: depends only on the static scale and element counts.
    log_det = jnp.float32(math.log(abs(float(scale))) * (N / B))
    return y, log_det


if __name__ == "__main__":
    key = jax.random.PRNGKey(0)
    B, C, H, W = 2, 4, 16, 16
    x = jax.random.normal(key, (B, C, H, W), dtype=jnp.float32)

    # Deterministic "buffer" values (module __init__ args).
    scale = 2.5
    shift = -0.75

    fwd = jax.jit(lambda xx: affine_scalar_forward(xx, scale, shift))
    y, log_det = fwd(x)
    jax.block_until_ready((y, log_det))

    # Reference check (plain JAX, mirrors the PyTorch forward).
    y_ref = x * scale + shift
    ld_ref = jnp.log(jnp.abs(jnp.float32(scale))) * (x.size / B)
    assert jnp.allclose(y, y_ref, atol=1e-6, rtol=1e-6)
    assert jnp.allclose(log_det, ld_ref, atol=1e-5, rtol=1e-5)

    print("KERNEL_OK")
</pallas_src>

<mosaic_0001>
module attributes {stable_mosaic.version = 11 : i64} {
  func.func @kernel(%arg0: i32, %arg1: memref<8x256xf32, #tpu.memory_space<vmem>>, %arg2: memref<8x256xf32, #tpu.memory_space<vmem>>) attributes {dimension_semantics = [#tpu.dimension_semantics<parallel>], iteration_bounds = array<i64: 1>, scalar_prefetch = 0 : i64, scratch_operands = 0 : i64, tpu.core_type = #tpu.core_type<tc>, window_params = [{transform_indices = @transform_0, window_bounds = array<i64: 8, 256>}, {transform_indices = @transform_1, window_bounds = array<i64: 8, 256>}]} {
    %c0 = arith.constant 0 : index
    %c0_0 = arith.constant 0 : index
    %0 = vector.load %arg1[%c0, %c0_0] : memref<8x256xf32, #tpu.memory_space<vmem>>, vector<8x256xf32>
    %cst = arith.constant 2.500000e+00 : f32
    %1 = vector.broadcast %cst : f32 to vector<8x256xf32>
    %2 = arith.mulf %0, %1 : vector<8x256xf32>
    %cst_1 = arith.constant -7.500000e-01 : f32
    %3 = vector.broadcast %cst_1 : f32 to vector<8x256xf32>
    %4 = arith.addf %2, %3 : vector<8x256xf32>
    %c0_2 = arith.constant 0 : index
    %c0_3 = arith.constant 0 : index
    %5 = vector.load %arg2[%c0_2, %c0_3] : memref<8x256xf32, #tpu.memory_space<vmem>>, vector<8x256xf32>
    tpu.vector_store %arg2[%c0_2, %c0_3], %4 {strides = array<i32>} : memref<8x256xf32, #tpu.memory_space<vmem>>, vector<8x256xf32>,
    return
  }
  func.func @transform_0(%arg0: i32) -> (i32, i32) {
    %c0_i32 = arith.constant 0 : i32
    %c0_i32_0 = arith.constant 0 : i32
    return %arg0, %c0_i32 : i32, i32
  }
  func.func @transform_1(%arg0: i32) -> (i32, i32) {
    %c0_i32 = arith.constant 0 : i32
    %c0_i32_0 = arith.constant 0 : i32
    return %arg0, %c0_i32 : i32, i32
  }
}

</mosaic_0001>

<bundles_post_ra>
// kernel: _lambda_.1
= control target key start
LH: loop header
LB: loop body
LE: loop exit
PB: predicated region body
PF: predicated region fallthrough
CT: control target
= control target key end

     0   :  { %s42_s0 = inlined_call_operand.vmem [shape: f32[8,256], index: 0, kind: input, shape index: {}]   ;;  %s43_s1 = inlined_call_operand.vmem [shape: f32[8,256], index: 1, kind: output, shape index: {}]  }
   0x1   :  { %v8_v0 = vld [vmem:[%s42_s0] sm:$0xff]  ;;  %v9_v1 = vld [vmem:[%s42_s0 + $0x8] sm:$0xff] }
   0x2   :  { %v10_v2 = vmul.f32 2.5, %v8_v0  ;;  %v11_v3 = vmul.f32 2.5, %v9_v1 }
   0x4   :  { %v12_v4 = vadd.f32 -0.75, %v10_v2  ;;  %v13_v5 = vadd.f32 -0.75, %v11_v3 }
   0x6   :  { %14 = vst [vmem:[%s43_s1] sm:$0xff] %v12_v4  ;;  %15 = vst [vmem:[%s43_s1 + $0x8] sm:$0xff] %v13_v5 }

</bundles_post_ra>
